<compile_context>
chip_gen: v7x
topology: tpu7x:2x2x1
jax: 0.10.0
libtpu: 0.0.40
codegen_flags: <defaults>
</compile_context>

<pallas_src>
import jax
import jax.numpy as jnp
from jax.experimental import pallas as pl
from jax.experimental.pallas import tpu as pltpu

BN_EPS = 1e-5


def _round_up(x, m):
    return ((x + m - 1) // m) * m


def _vmem_limit_bytes():
    cap = 128 << 20
    try:
        cap = int(getattr(pltpu.get_tpu_info(), "vmem_capacity_bytes", cap))
    except Exception:
        pass
    # Proportional headroom (~4 MiB on 64 MiB parts, ~8 MiB on 128 MiB parts).
    headroom = max(cap // 16, 4 << 20)
    return cap - headroom


# ---------------------------------------------------------------------------
# Pass 1: h_tile = dinv[rows] * sum_k (A+I)[rows, k-tile] @ XW_scaled[k-tile]
#         plus per-row-tile partial channel sum / sum-of-squares.
# ---------------------------------------------------------------------------
def gcn_agg_kernel(adj_ref, xw_ref, dinv_ref, h_ref, sum_ref, sq_ref, acc_ref):
    k = pl.program_id(1)

    @pl.when(k == 0)
    def _():
        acc_ref[...] = jnp.zeros_like(acc_ref)

    acc_ref[...] += jnp.dot(adj_ref[...], xw_ref[...],
                            preferred_element_type=jnp.float32)

    @pl.when(k == pl.num_programs(1) - 1)
    def _():
        h = acc_ref[...] * dinv_ref[...]          # left D^{-1/2} row scale (f32)
        h_ref[...] = h.astype(h_ref.dtype)        # bf16 writeback
        s = jnp.sum(h, axis=0, keepdims=True)     # (1, c_pad), f32
        q = jnp.sum(h * h, axis=0, keepdims=True)
        sum_ref[...] = jnp.broadcast_to(s, sum_ref.shape)
        sq_ref[...] = jnp.broadcast_to(q, sq_ref.shape)


# ---------------------------------------------------------------------------
# Pass 2: fused (precomputed) BatchNorm affine + ReLU.
# ---------------------------------------------------------------------------
def bn_relu_kernel(h_ref, scale_ref, shift_ref, o_ref):
    h = h_ref[...].astype(jnp.float32)
    o_ref[...] = jnp.maximum(h * scale_ref[...] + shift_ref[...], 0.0
                             ).astype(o_ref.dtype)


def gnn_block(x, edge_index, weight, bias, gamma, beta):
    """GCNConv + BatchNorm1d(train) + ReLU.

    x: [N, C_in] f32, edge_index: [2, E] int32, weight: [C_in, C_out],
    bias/gamma/beta: [C_out].  `bias` is accepted for API parity but not
    applied: a per-channel constant added before batch-stat BatchNorm cancels
    exactly.
    """
    n, _ = x.shape
    c_out = weight.shape[1]
    c_pad = _round_up(c_out, 128)
    del bias  # cancelled exactly by the batch-stat BatchNorm that follows

    vmem_limit = _vmem_limit_bytes()
    budget = (vmem_limit * 7) // 8

    # ---- tile selection (footprint is N-independent thanks to K tiling) ----
    if n <= 512:
        n_pad = _round_up(n, 128)
        tile_m = tile_k = n_pad
    else:
        n_pad = _round_up(n, 512)
        tile_m = tile_k = 512

    def _fp1(tm, tk):
        return (2 * tm * tk * 2          # adj tile (bf16, double-buffered)
                + 2 * tk * c_pad * 2     # xw tile  (bf16, double-buffered)
                + 2 * tm * 4             # dinv tile
                + 2 * tm * c_pad * 2     # h out tile (bf16, double-buffered)
                + 4 * 8 * c_pad * 4      # partial stats (2 outs, 2-buf)
                + tm * c_pad * 4)        # f32 accumulator scratch

    while tile_m > 64 and _fp1(tile_m, tile_k) > budget:
        tile_m //= 2

    grid_m = n_pad // tile_m
    grid_k = n_pad // tile_k

    # ---- glue (plain JAX): (A+I) as exact 0/1 bf16, degrees, XW ------------
    src = edge_index[0].astype(jnp.int32)
    dst = edge_index[1].astype(jnp.int32)
    adj = jnp.zeros((n_pad, n_pad), jnp.bfloat16).at[dst, src].set(1.0)
    idx = jnp.arange(n)
    adj = adj.at[idx, idx].set(1.0)            # self loops on real nodes only
    deg = jnp.sum(adj, axis=1, dtype=jnp.float32)
    dinv = jnp.where(deg > 0, jax.lax.rsqrt(deg), 0.0)      # (n_pad,) f32

    # XW hoisted out of the kernel; fold the right-hand D^{-1/2} (in f32).
    xw = jnp.dot(x.astype(jnp.float32), weight.astype(jnp.float32))
    xw = xw * dinv[:n, None]
    xw_p = jnp.zeros((n_pad, c_pad), jnp.bfloat16).at[:n, :c_out].set(
        xw.astype(jnp.bfloat16))
    dinv_col = dinv[:, None]                                  # (n_pad, 1) f32

    # ---- pass 1: aggregation + per-tile partial channel stats --------------
    h, psum, psq = pl.pallas_call(
        gcn_agg_kernel,
        out_shape=(
            jax.ShapeDtypeStruct((n_pad, c_pad), jnp.bfloat16),
            jax.ShapeDtypeStruct((grid_m * 8, c_pad), jnp.float32),
            jax.ShapeDtypeStruct((grid_m * 8, c_pad), jnp.float32),
        ),
        grid_spec=pltpu.PrefetchScalarGridSpec(
            num_scalar_prefetch=0,
            grid=(grid_m, grid_k),
            in_specs=[
                pl.BlockSpec((tile_m, tile_k), lambda i, k: (i, k)),   # A+I
                pl.BlockSpec((tile_k, c_pad), lambda i, k: (k, 0)),    # XW
                pl.BlockSpec((tile_m, 1), lambda i, k: (i, 0)),        # dinv
            ],
            out_specs=[
                pl.BlockSpec((tile_m, c_pad), lambda i, k: (i, 0)),    # h (bf16)
                pl.BlockSpec((8, c_pad), lambda i, k: (i, 0)),         # part sum
                pl.BlockSpec((8, c_pad), lambda i, k: (i, 0)),         # part sumsq
            ],
            scratch_shapes=[pltpu.VMEM((tile_m, c_pad), jnp.float32)],
        ),
        compiler_params=pltpu.CompilerParams(
            dimension_semantics=("parallel", "arbitrary"),
            vmem_limit_bytes=vmem_limit),
    )(adj, xw_p, dinv_col)

    # ---- glue: reduce tiny partial stats, derive scale/shift once ----------
    ch_sum = jnp.sum(psum[::8, :], axis=0, keepdims=True)     # (1, c_pad)
    ch_sq = jnp.sum(psq[::8, :], axis=0, keepdims=True)
    mean = ch_sum / n
    var = jnp.maximum(ch_sq / n - mean * mean, 0.0)
    gamma_p = jnp.zeros((1, c_pad), jnp.float32).at[0, :c_out].set(
        gamma.astype(jnp.float32))
    beta_p = jnp.zeros((1, c_pad), jnp.float32).at[0, :c_out].set(
        beta.astype(jnp.float32))
    scale = gamma_p * jax.lax.rsqrt(var + BN_EPS)
    shift = beta_p - mean * scale

    # ---- pass 2: fused affine + ReLU with its own (large) row tile ---------
    if n_pad <= 4096:
        tile_m2 = n_pad
    else:
        tile_m2 = 4096
        while n_pad % tile_m2 != 0:
            tile_m2 //= 2
    while tile_m2 > 128 and 12 * tile_m2 * c_pad > budget:
        tile_m2 //= 2
    grid_m2 = n_pad // tile_m2

    out = pl.pallas_call(
        bn_relu_kernel,
        out_shape=jax.ShapeDtypeStruct((n_pad, c_pad), jnp.float32),
        grid_spec=pltpu.PrefetchScalarGridSpec(
            num_scalar_prefetch=0,
            grid=(grid_m2,),
            in_specs=[
                pl.BlockSpec((tile_m2, c_pad), lambda i: (i, 0)),
                pl.BlockSpec((1, c_pad), lambda i: (0, 0)),
                pl.BlockSpec((1, c_pad), lambda i: (0, 0)),
            ],
            out_specs=pl.BlockSpec((tile_m2, c_pad), lambda i: (i, 0)),
        ),
        compiler_params=pltpu.CompilerParams(
            dimension_semantics=("parallel",),
            vmem_limit_bytes=vmem_limit),
    )(h, scale, shift)

    return out[:n, :c_out]


if __name__ == "__main__":
    # Small deterministic problem: 256 nodes, 8 in-channels, 16 out-channels.
    N, C_IN, C_OUT = 256, 8, 16
    key = jax.random.PRNGKey(0)
    k_x, k_w, k_b, k_g, k_be = jax.random.split(key, 5)

    x = jax.random.normal(k_x, (N, C_IN), jnp.float32)

    # Deterministic bidirectional ring graph.
    s = jnp.arange(N, dtype=jnp.int32)
    d = (s + 1) % N
    edge_index = jnp.stack(
        [jnp.concatenate([s, d]), jnp.concatenate([d, s])], axis=0)

    weight = jax.random.normal(k_w, (C_IN, C_OUT), jnp.float32) / jnp.sqrt(
        jnp.float32(C_IN))
    bias = 0.05 * jax.random.normal(k_b, (C_OUT,), jnp.float32)
    gamma = 1.0 + 0.1 * jax.random.normal(k_g, (C_OUT,), jnp.float32)
    beta = 0.1 * jax.random.normal(k_be, (C_OUT,), jnp.float32)

    out = gnn_block(x, edge_index, weight, bias, gamma, beta)
    jax.block_until_ready(out)

    # Pure-JAX f32 reference (includes the GCN bias, which BN cancels exactly).
    adj = jnp.zeros((N, N), jnp.float32).at[edge_index[1], edge_index[0]].set(1.0)
    adj = adj.at[jnp.arange(N), jnp.arange(N)].set(1.0)
    deg = adj.sum(axis=1)
    dis = jnp.where(deg > 0, jax.lax.rsqrt(deg), 0.0)
    a_hat = dis[:, None] * adj * dis[None, :]
    h_ref = a_hat @ (x @ weight) + bias[None, :]
    mu = h_ref.mean(axis=0, keepdims=True)
    var = ((h_ref - mu) ** 2).mean(axis=0, keepdims=True)
    ref = jnp.maximum(
        (h_ref - mu) * jax.lax.rsqrt(var + BN_EPS) * gamma + beta, 0.0)

    # bf16 matmul inputs / bf16 intermediate h -> tolerance loosened vs f32 ref.
    assert jnp.allclose(out, ref, atol=5e-2, rtol=5e-2), "mismatch vs reference"
    print("KERNEL_OK")
</pallas_src>

<mosaic_0001>
module attributes {stable_mosaic.version = 11 : i64} {
  func.func @gcn_agg_kernel(%arg0: i32, %arg1: i32, %arg2: memref<256x256xbf16, #tpu.memory_space<vmem>>, %arg3: memref<256x128xbf16, #tpu.memory_space<vmem>>, %arg4: memref<256x1xf32, #tpu.memory_space<vmem>>, %arg5: memref<256x128xbf16, #tpu.memory_space<vmem>>, %arg6: memref<8x128xf32, #tpu.memory_space<vmem>>, %arg7: memref<8x128xf32, #tpu.memory_space<vmem>>, %arg8: memref<256x128xf32, #tpu.memory_space<vmem>>) attributes {dimension_semantics = [#tpu.dimension_semantics<parallel>, #tpu.dimension_semantics<arbitrary>], iteration_bounds = array<i64: 1, 1>, scalar_prefetch = 0 : i64, scratch_operands = 1 : i64, tpu.core_type = #tpu.core_type<tc>, window_params = [{transform_indices = @transform_0, window_bounds = array<i64: 256, 256>}, {transform_indices = @transform_1, window_bounds = array<i64: 256, 128>}, {transform_indices = @transform_2, window_bounds = array<i64: 256, 1>}, {transform_indices = @transform_3, window_bounds = array<i64: 256, 128>}, {transform_indices = @transform_4, window_bounds = array<i64: 8, 128>}, {transform_indices = @transform_5, window_bounds = array<i64: 8, 128>}]} {
    %c0_i32 = arith.constant 0 : i32
    %0 = arith.cmpi eq, %arg1, %c0_i32 : i32
    %1 = arith.extui %0 : i1 to i32
    %c0_i32_0 = arith.constant 0 : i32
    %2 = arith.cmpi ne, %1, %c0_i32_0 : i32
    scf.if %2 {
      %cst_10 = arith.constant 0.000000e+00 : f32
      %12 = vector.broadcast %cst_10 : f32 to vector<256x128xf32>
      %c0_11 = arith.constant 0 : index
      %c0_12 = arith.constant 0 : index
      %13 = vector.load %arg8[%c0_11, %c0_12] : memref<256x128xf32, #tpu.memory_space<vmem>>, vector<256x128xf32>
      tpu.vector_store %arg8[%c0_11, %c0_12], %12 {strides = array<i32>} : memref<256x128xf32, #tpu.memory_space<vmem>>, vector<256x128xf32>,
    } else {
    }
    %c0 = arith.constant 0 : index
    %c0_1 = arith.constant 0 : index
    %3 = vector.load %arg8[%c0, %c0_1] : memref<256x128xf32, #tpu.memory_space<vmem>>, vector<256x128xf32>
    %c0_2 = arith.constant 0 : index
    %c0_3 = arith.constant 0 : index
    %4 = vector.load %arg2[%c0_2, %c0_3] : memref<256x256xbf16, #tpu.memory_space<vmem>>, vector<256x256xbf16>
    %c0_4 = arith.constant 0 : index
    %c0_5 = arith.constant 0 : index
    %5 = vector.load %arg3[%c0_4, %c0_5] : memref<256x128xbf16, #tpu.memory_space<vmem>>, vector<256x128xbf16>
    %cst = arith.constant dense<0.000000e+00> : vector<256x128xf32>
    %6 = tpu.matmul %4, %5, %cst {dimension_numbers = #tpu.dot_dimension_numbers<[1], [0], [0], [1], [0, 0, 1, 1], [], []>} : vector<256x256xbf16>, vector<256x128xbf16>, vector<256x128xf32> -> vector<256x128xf32>
    %7 = arith.addf %3, %6 : vector<256x128xf32>
    %c0_6 = arith.constant 0 : index
    %c0_7 = arith.constant 0 : index
    %8 = vector.load %arg8[%c0_6, %c0_7] : memref<256x128xf32, #tpu.memory_space<vmem>>, vector<256x128xf32>
    tpu.vector_store %arg8[%c0_6, %c0_7], %7 {strides = array<i32>} : memref<256x128xf32, #tpu.memory_space<vmem>>, vector<256x128xf32>,
    %c0_i32_8 = arith.constant 0 : i32
    %9 = arith.cmpi eq, %arg1, %c0_i32_8 : i32
    %10 = arith.extui %9 : i1 to i32
    %c0_i32_9 = arith.constant 0 : i32
    %11 = arith.cmpi ne, %10, %c0_i32_9 : i32
    scf.if %11 {
      %c0_10 = arith.constant 0 : index
      %c0_11 = arith.constant 0 : index
      %12 = vector.load %arg8[%c0_10, %c0_11] : memref<256x128xf32, #tpu.memory_space<vmem>>, vector<256x128xf32>
      %c0_12 = arith.constant 0 : index
      %c0_13 = arith.constant 0 : index
      %13 = vector.load %arg4[%c0_12, %c0_13] : memref<256x1xf32, #tpu.memory_space<vmem>>, vector<256x1xf32>
      %14 = vector.broadcast %13 : vector<256x1xf32> to vector<256x128xf32>
      %15 = arith.mulf %12, %14 : vector<256x128xf32>
      %16 = arith.truncf %15 : vector<256x128xf32> to vector<256x128xbf16>
      %c0_14 = arith.constant 0 : index
      %c0_15 = arith.constant 0 : index
      %17 = vector.load %arg5[%c0_14, %c0_15] : memref<256x128xbf16, #tpu.memory_space<vmem>>, vector<256x128xbf16>
      tpu.vector_store %arg5[%c0_14, %c0_15], %16 {strides = array<i32>} : memref<256x128xbf16, #tpu.memory_space<vmem>>, vector<256x128xbf16>,
      %cst_16 = arith.constant dense<0.000000e+00> : vector<128xf32>
      %18 = vector.multi_reduction <add>, %15, %cst_16 [0] : vector<256x128xf32> to vector<128xf32>
      %19 = vector.shape_cast %18 : vector<128xf32> to vector<1x128xf32>
      %20 = arith.mulf %15, %15 : vector<256x128xf32>
      %cst_17 = arith.constant dense<0.000000e+00> : vector<128xf32>
      %21 = vector.multi_reduction <add>, %20, %cst_17 [0] : vector<256x128xf32> to vector<128xf32>
      %22 = vector.shape_cast %21 : vector<128xf32> to vector<1x128xf32>
      %23 = vector.shape_cast %19 : vector<1x128xf32> to vector<1x128xf32>
      %24 = vector.broadcast %23 : vector<1x128xf32> to vector<8x128xf32>
      %c0_18 = arith.constant 0 : index
      %c0_19 = arith.constant 0 : index
      %25 = vector.load %arg6[%c0_18, %c0_19] : memref<8x128xf32, #tpu.memory_space<vmem>>, vector<8x128xf32>
      tpu.vector_store %arg6[%c0_18, %c0_19], %24 {strides = array<i32>} : memref<8x128xf32, #tpu.memory_space<vmem>>, vector<8x128xf32>,
      %26 = vector.shape_cast %22 : vector<1x128xf32> to vector<1x128xf32>
      %27 = vector.broadcast %26 : vector<1x128xf32> to vector<8x128xf32>
      %c0_20 = arith.constant 0 : index
      %c0_21 = arith.constant 0 : index
      %28 = vector.load %arg7[%c0_20, %c0_21] : memref<8x128xf32, #tpu.memory_space<vmem>>, vector<8x128xf32>
      tpu.vector_store %arg7[%c0_20, %c0_21], %27 {strides = array<i32>} : memref<8x128xf32, #tpu.memory_space<vmem>>, vector<8x128xf32>,
    } else {
    }
    return
  }
  func.func @transform_0(%arg0: i32, %arg1: i32) -> (i32, i32) {
    %c0_i32 = arith.constant 0 : i32
    return %arg0, %arg1 : i32, i32
  }
  func.func @transform_1(%arg0: i32, %arg1: i32) -> (i32, i32) {
    %c0_i32 = arith.constant 0 : i32
    %c0_i32_0 = arith.constant 0 : i32
    return %arg1, %c0_i32 : i32, i32
  }
  func.func @transform_2(%arg0: i32, %arg1: i32) -> (i32, i32) {
    %c0_i32 = arith.constant 0 : i32
    %c0_i32_0 = arith.constant 0 : i32
    return %arg0, %c0_i32 : i32, i32
  }
  func.func @transform_3(%arg0: i32, %arg1: i32) -> (i32, i32) {
    %c0_i32 = arith.constant 0 : i32
    %c0_i32_0 = arith.constant 0 : i32
    return %arg0, %c0_i32 : i32, i32
  }
  func.func @transform_4(%arg0: i32, %arg1: i32) -> (i32, i32) {
    %c0_i32 = arith.constant 0 : i32
    %c0_i32_0 = arith.constant 0 : i32
    return %arg0, %c0_i32 : i32, i32
  }
  func.func @transform_5(%arg0: i32, %arg1: i32) -> (i32, i32) {
    %c0_i32 = arith.constant 0 : i32
    %c0_i32_0 = arith.constant 0 : i32
    return %arg0, %c0_i32 : i32, i32
  }
}

</mosaic_0001>

<bundles_post_ra>
// kernel: tpu_custom_call.1
= control target key start
LH: loop header
LB: loop body
LE: loop exit
PB: predicated region body
PF: predicated region fallthrough
CT: control target
= control target key end

     0   :  { %11 = vsyncpa [#allocation4], 0  ;;  %s2049_s0 = inlined_call_operand.hbm [shape: bf16[256,256], index: 0, kind: input, shape index: {}]   ;;  %s2050_s1 = inlined_call_operand.hbm [shape: bf16[256,128], index: 1, kind: input, shape index: {}]   ;;  %s2051_s2 = inlined_call_operand.hbm [shape: f32[256,1], index: 2, kind: input, shape index: {}]   ;;  %s2052_s3 = inlined_call_operand.hbm [shape: bf16[256,128], index: 3, kind: output, shape index: {0}]   ;;  %s2053_s4 = inlined_call_operand.hbm [shape: f32[8,128], index: 4, kind: output, shape index: {1}]   ;;  %s2054_s5 = inlined_call_operand.hbm [shape: f32[8,128], index: 5, kind: output, shape index: {2}]  }
   0x1   :  { %12 = vsyncpa [#allocation7], 0 }
   0x2   :  { %13 = vsyncpa [#allocation5], 0 }
   0x3   :  { %14 = vsyncpa [#allocation11], 0  ;;  %s1798_s18 = smov [#allocation6]   ;;  %s1658_s22 = scalar_lea.hbm %s2050_s1, 2048 }
   0x4   :  { %s32_s19 = sshll.u32 %s1798_s18, 4  ;;  %p1659_p0 = scmp.ne.s32.totalorder %s2050_s1, %s1658_s22  ;;  %s33_s19 = int_to_ptr.vmem [resolvable:$true] %s32_s19 }
   0x5   :  { %p1662_p1 = scmp.lt.u32.totalorder %s1658_s22, %s2050_s1 }
   0x7   :  { %p1664_p2 = pnand %p1662_p1, %p1659_p0 }
   0x9   :  { %1667 = shalt.err (!%p1664_p2)
}
   0xa   :  { %s1668_s27 = scalar_lea.vmem %s33_s19, 2048  ;;  %p1673_p4 = scmp.lt.s32.totalorder %s33_s19, %s33_s19 }
   0xb   :  { %p1669_p3 = scmp.ne.s32.totalorder %s33_s19, %s1668_s27  ;;  %p1674_p5 = scmp.lt.s32.totalorder %s1668_s27, %s1668_s27 }
   0xd   :  { %p1675_p6 = por %p1674_p5, %p1673_p4 }
   0xf   :  { %p1676_p7 = pnand %p1675_p6, %p1669_p3 }
  0x11   :  { %1679 = shalt.err (!%p1676_p7)
}
  0x12   :  { %s1799_s28 = smov 64   ;;  %s1800_s29 = smov 4  }
  0x13   :  { %38 = dma.hbm_to_vmem [thread:$0]  %s2050_s1, 2048, %s33_s19, [#allocation7], %s1799_s28, %s1799_s28, %s1800_s29  }
  0x14   :  { %s1801_s7 = smov [#allocation3]   ;;  %s1680_s11 = scalar_lea.hbm %s2049_s0, 4096 }
  0x15   :  { %s20_s8 = sshll.u32 %s1801_s7, 4  ;;  %p1681_p8 = scmp.ne.s32.totalorder %s2049_s0, %s1680_s11  ;;  %s21_s8 = int_to_ptr.vmem [resolvable:$true] %s20_s8 }
  0x16   :  { %p1684_p9 = scmp.lt.u32.totalorder %s1680_s11, %s2049_s0 }
  0x18   :  { %p1686_p10 = pnand %p1684_p9, %p1681_p8 }
  0x1a   :  { %1689 = shalt.err (!%p1686_p10)
}
  0x1b   :  { %s1690_s16 = scalar_lea.vmem %s21_s8, 4096  ;;  %p1695_p12 = scmp.lt.s32.totalorder %s21_s8, %s21_s8 }
  0x1c   :  { %p1691_p11 = scmp.ne.s32.totalorder %s21_s8, %s1690_s16  ;;  %p1696_p13 = scmp.lt.s32.totalorder %s1690_s16, %s1690_s16 }
  0x1e   :  { %p1697_p0 = por %p1696_p13, %p1695_p12 }
  0x20   :  { %p1698_p1 = pnand %p1697_p0, %p1691_p11 }
  0x22   :  { %1701 = shalt.err (!%p1698_p1)
}
  0x23   :  { %s1802_s1 = smov 128   ;;  %s1803_s17 = smov 8  }
  0x24   :  { %26 = dma.hbm_to_vmem [thread:$0]  %s2049_s0, 4096, %s21_s8, [#allocation4], %s1802_s1, %s1802_s1, %s1803_s17  }
  0x25   :  { %s1804_s20 = smov [#allocation8]   ;;  %s1702_s24 = scalar_lea.hbm %s2051_s2, 4096 }
  0x26   :  { %s44_s21 = sshll.u32 %s1804_s20, 4  ;;  %p1703_p2 = scmp.ne.s32.totalorder %s2051_s2, %s1702_s24  ;;  %s45_s21 = int_to_ptr.vmem [resolvable:$true] %s44_s21 }
  0x27   :  { %p1706_p3 = scmp.lt.u32.totalorder %s1702_s24, %s2051_s2 }
  0x29   :  { %p1708_p4 = pnand %p1706_p3, %p1703_p2 }
  0x2b   :  { %1711 = shalt.err (!%p1708_p4)
}
  0x2c   :  { %s1712_s6 = scalar_lea.vmem %s45_s21, 4096  ;;  %p1717_p6 = scmp.lt.s32.totalorder %s45_s21, %s45_s21 }
  0x2d   :  { %p1713_p5 = scmp.ne.s32.totalorder %s45_s21, %s1712_s6  ;;  %p1718_p7 = scmp.lt.s32.totalorder %s1712_s6, %s1712_s6 }
  0x2f   :  { %p1719_p8 = por %p1718_p7, %p1717_p6 }
  0x31   :  { %p1720_p9 = pnand %p1719_p8, %p1713_p5 }
  0x33   :  { %1723 = shalt.err (!%p1720_p9)
}
  0x34   :  { %50 = dma.hbm_to_vmem [thread:$0]  %s2051_s2, 4096, %s45_s21, [#allocation7], %s1802_s1, %s1802_s1, %s1803_s17  }
  0x35   :  { %1790 = dma.done.wait [#allocation4], 4096  }
  0x36   :  { %1791 = vsyncadd [#allocation4], 4294963200 }
  0x37   :  { %1792 = dma.done.wait [#allocation7], 6144  }
  0x38   :  { %1793 = vsyncadd [#allocation7], 4294961152  ;;  %v1805_v0 = vmov 0   ;;  %v1594_v1 = vld [vmem:[#allocation6 + $0x40] sm:$0xff]   ;;  %v1596_v3 = vld [vmem:[#allocation6 + $0x48] sm:$0xff]   ;;  %s1806_s2 = smov [#allocation9]  }
  0x39   :  { %1592 = vset.pattern.permute.xlu0 %v1805_v0  ;;  %1593 = vset.pattern.permute.xlu1 %v1805_v0  ;;  %v1595_v2 = vld [vmem:[#allocation6] sm:$0xff]   ;;  %v1597_v4 = vld [vmem:[#allocation6 + $0x8] sm:$0xff]   ;;  %v1598_v5 = vld [vmem:[#allocation6 + $0x50] sm:$0xff]   ;;  %s1206_s8 = sshll.u32 %s1806_s2, 4  ;;  %s1207_s8 = int_to_ptr.vmem [resolvable:$true] %s1206_s8 }
  0x3a   :  { %1453 = vmatprep.subr.bf16.mxu0 %v1594_v1  ;;  %1565 = vmatprep.subr.bf16.mxu1 %v1594_v1  ;;  %v1599_v6 = vld [vmem:[#allocation6 + $0x10] sm:$0xff]   ;;  %v1600_v7 = vld [vmem:[#allocation6 + $0x58] sm:$0xff]   ;;  %v1602_v9 = vld [vmem:[#allocation6 + $0x60] sm:$0xff]   ;;  %s1724_s9 = scalar_lea.vmem %s1207_s8, 2048  ;;  %p1729_p11 = scmp.lt.s32.totalorder %s1207_s8, %s1207_s8 }
  0x3b   :  { %1454 = vmatpush3.bf16.msra.mxu0 %v1595_v2  ;;  %1573 = vmatpush3.bf16.msra.mxu1 %v1595_v2  ;;  %v1601_v8 = vld [vmem:[#allocation6 + $0x18] sm:$0xff]   ;;  %v1603_v10 = vld [vmem:[#allocation6 + $0x20] sm:$0xff]   ;;  %v1604_v11 = vld [vmem:[#allocation6 + $0x68] sm:$0xff]   ;;  %p1725_p10 = scmp.ne.s32.totalorder %s1207_s8, %s1724_s9  ;;  %p1730_p12 = scmp.lt.s32.totalorder %s1724_s9, %s1724_s9 }
  0x3c   :  { %1455 = vmatprep.subr.bf16.mxu0 %v1596_v3  ;;  %1566 = vmatprep.subr.bf16.mxu1 %v1596_v3  ;;  %v1612_v12 = vld [vmem:[#allocation3 + $0x4] ss:$8 sps:$4 sm:$0xff]   ;;  %v1606_v15 = vld [vmem:[#allocation6 + $0x70] sm:$0xff]   ;;  %v1608_v17 = vld [vmem:[#allocation6 + $0x78] sm:$0xff]  }
  0x3d   :  { %v1615_v13 = vld [vmem:[#allocation3 + $0x84] ss:$8 sps:$4 sm:$0xff]   ;;  %481 = vmatprep.mubr.bf16.mxu0 %v1612_v12  ;;  %v1607_v16 = vld [vmem:[#allocation6 + $0x30] sm:$0xff]   ;;  %v1609_v18 = vld [vmem:[#allocation6 + $0x38] sm:$0xff]   ;;  %p1731_p13 = por %p1730_p12, %p1729_p11 }
  0x3e   :  { %v1605_v14 = vld [vmem:[#allocation6 + $0x28] sm:$0xff]   ;;  %545 = vmatprep.mubr.bf16.mxu1 %v1615_v13  ;;  %v1616_v21 = vld [vmem:[#allocation3 + $0x14] ss:$8 sps:$4 sm:$0xff]   ;;  %v709_v23 = vld [vmem:[#allocation8] sm:$0xff] }
  0x3f   :  { %1456 = vmatpush3.bf16.msra.mxu0 %v1597_v4  ;;  %1574 = vmatpush3.bf16.msra.mxu1 %v1597_v4  ;;  %v1610_v19 = vld [vmem:[#allocation3] ss:$8 sps:$4 sm:$0xff]   ;;  %v1618_v22 = vld [vmem:[#allocation3 + $0x94] ss:$8 sps:$4 sm:$0xff]   ;;  %v1620_v25 = vld [vmem:[#allocation3 + $0x10] ss:$8 sps:$4 sm:$0xff]   ;;  %p1732_p0 = pnand %p1731_p13, %p1725_p10 }
  0x40   :  { %1457 = vmatprep.subr.bf16.mxu0 %v1598_v5  ;;  %1567 = vmatprep.subr.bf16.mxu1 %v1598_v5  ;;  %v1613_v20 = vld [vmem:[#allocation3 + $0x80] ss:$8 sps:$4 sm:$0xff]   ;;  %v711_v24 = vld [vmem:[#allocation8 + $0x10] sm:$0xff]  ;;  %v1622_v28 = vld [vmem:[#allocation3 + $0x24] ss:$8 sps:$4 sm:$0xff]  }
  0x41   :  { %743 = vperm.xlu0 %1592, %v709_v23   ;;  %v1621_v26 = vld [vmem:[#allocation3 + $0x90] ss:$8 sps:$4 sm:$0xff]   ;;  %753 = vperm.xlu1 %1593, %v711_v24   ;;  %v710_v27 = vld [vmem:[#allocation8 + $0x8] sm:$0xff]  ;;  %v713_v31 = vld [vmem:[#allocation8 + $0x20] sm:$0xff] }
  0x42   :  { %v1624_v29 = vld [vmem:[#allocation3 + $0xa4] ss:$8 sps:$4 sm:$0xff]   ;;  %v712_v30 = vld [vmem:[#allocation8 + $0x18] sm:$0xff]  ;;  %v715_v33 = vld [vmem:[#allocation8 + $0x30] sm:$0xff] }
  0x43   :  { %1458 = vmatpush3.bf16.msra.mxu0 %v1599_v6  ;;  %1575 = vmatpush3.bf16.msra.mxu1 %v1599_v6  ;;  %v714_v32 = vld [vmem:[#allocation8 + $0x28] sm:$0xff]  ;;  %v1628_v36 = vld [vmem:[#allocation3 + $0x34] ss:$8 sps:$4 sm:$0xff]   ;;  %v717_v39 = vld [vmem:[#allocation8 + $0x40] sm:$0xff] }
  0x44   :  { %1459 = vmatprep.subr.bf16.mxu0 %v1600_v7  ;;  %1568 = vmatprep.subr.bf16.mxu1 %v1600_v7  ;;  %v1626_v34 = vld [vmem:[#allocation3 + $0x20] ss:$8 sps:$4 sm:$0xff]   ;;  %v1630_v37 = vld [vmem:[#allocation3 + $0xb4] ss:$8 sps:$4 sm:$0xff]   ;;  %v1632_v42 = vld [vmem:[#allocation3 + $0x30] ss:$8 sps:$4 sm:$0xff]  }
  0x45   :  { %748 = vperm.xlu0 %1592, %v710_v27   ;;  %758 = vperm.xlu1 %1593, %v712_v30   ;;  %v1627_v35 = vld [vmem:[#allocation3 + $0xa0] ss:$8 sps:$4 sm:$0xff]   ;;  %v716_v38 = vld [vmem:[#allocation8 + $0x38] sm:$0xff]  ;;  %v719_v41 = vld [vmem:[#allocation8 + $0x50] sm:$0xff] }
  0x46   :  { %v718_v40 = vld [vmem:[#allocation8 + $0x48] sm:$0xff]  ;;  %v1633_v43 = vld [vmem:[#allocation3 + $0xb0] ss:$8 sps:$4 sm:$0xff]   ;;  %v721_v47 = vld [vmem:[#allocation8 + $0x60] sm:$0xff] }
  0x47   :  { %1460 = vmatpush3.bf16.msra.mxu0 %v1601_v8  ;;  %1576 = vmatpush3.bf16.msra.mxu1 %v1601_v8  ;;  %v1634_v44 = vld [vmem:[#allocation3 + $0x44] ss:$8 sps:$4 sm:$0xff]   ;;  %v720_v46 = vld [vmem:[#allocation8 + $0x58] sm:$0xff]  ;;  %v723_v49 = vld [vmem:[#allocation8 + $0x70] sm:$0xff] }
  0x48   :  { %1461 = vmatprep.subr.bf16.mxu0 %v1602_v9  ;;  %1569 = vmatprep.subr.bf16.mxu1 %v1602_v9  ;;  %v1636_v45 = vld [vmem:[#allocation3 + $0xc4] ss:$8 sps:$4 sm:$0xff]   ;;  %v1638_v50 = vld [vmem:[#allocation3 + $0x40] ss:$8 sps:$4 sm:$0xff]   ;;  %v1640_v52 = vld [vmem:[#allocation3 + $0x54] ss:$8 sps:$4 sm:$0xff]  }
  0x49   :  { %763 = vperm.xlu0 %1592, %v713_v31   ;;  %768 = vperm.xlu1 %1593, %v714_v32   ;;  %v722_v48 = vld [vmem:[#allocation8 + $0x68] sm:$0xff]  ;;  %v1642_v53 = vld [vmem:[#allocation3 + $0xd4] ss:$8 sps:$4 sm:$0xff]   ;;  %v725_v55 = vld [vmem:[#allocation8 + $0x80] sm:$0xff] }
  0x4a   :  { %v1639_v51 = vld [vmem:[#allocation3 + $0xc0] ss:$8 sps:$4 sm:$0xff]   ;;  %v724_v54 = vld [vmem:[#allocation8 + $0x78] sm:$0xff]  ;;  %v727_v57 = vld [vmem:[#allocation8 + $0x90] sm:$0xff] }
  0x4b   :  { %1462 = vmatpush3.bf16.msra.mxu0 %v1603_v10  ;;  %1577 = vmatpush3.bf16.msra.mxu1 %v1603_v10  ;;  %v726_v56 = vld [vmem:[#allocation8 + $0x88] sm:$0xff]  ;;  %v1644_v58 = vld [vmem:[#allocation3 + $0x50] ss:$8 sps:$4 sm:$0xff]   ;;  %v729_v63 = vld [vmem:[#allocation8 + $0xa0] sm:$0xff] }
  0x4c   :  { %1463 = vmatprep.subr.bf16.mxu0 %v1604_v11  ;;  %1570 = vmatprep.subr.bf16.mxu1 %v1604_v11  ;;  %v1645_v59 = vld [vmem:[#allocation3 + $0xd0] ss:$8 sps:$4 sm:$0xff]   ;;  %v1646_v60 = vld [vmem:[#allocation3 + $0x64] ss:$8 sps:$4 sm:$0xff]   ;;  %v1650_v2 = vld [vmem:[#allocation3 + $0x60] ss:$8 sps:$4 sm:$0xff]  }
  0x4d   :  { %773 = vperm.xlu0 %1592, %v715_v33   ;;  %778 = vperm.xlu1 %1593, %v716_v38   ;;  %v1648_v61 = vld [vmem:[#allocation3 + $0xe4] ss:$8 sps:$4 sm:$0xff]   ;;  %v728_v62 = vld [vmem:[#allocation8 + $0x98] sm:$0xff]  ;;  %v731_v1 = vld [vmem:[#allocation8 + $0xb0] sm:$0xff] }
  0x4e   :  { %v730_v0 = vld [vmem:[#allocation8 + $0xa8] sm:$0xff]  ;;  %v1652_v4 = vld [vmem:[#allocation3 + $0x74] ss:$8 sps:$4 sm:$0xff]   ;;  %v733_v7 = vld [vmem:[#allocation8 + $0xc0] sm:$0xff] }
  0x4f   :  { %1464 = vmatpush3.bf16.msra.mxu0 %v1605_v14  ;;  %1578 = vmatpush3.bf16.msra.mxu1 %v1605_v14  ;;  %v1651_v3 = vld [vmem:[#allocation3 + $0xe0] ss:$8 sps:$4 sm:$0xff]   ;;  %v1654_v5 = vld [vmem:[#allocation3 + $0xf4] ss:$8 sps:$4 sm:$0xff]   ;;  %v1656_v10 = vld [vmem:[#allocation3 + $0x70] ss:$8 sps:$4 sm:$0xff]  }
  0x50   :  { %1465 = vmatprep.subr.bf16.mxu0 %v1606_v15  ;;  %1571 = vmatprep.subr.bf16.mxu1 %v1606_v15  ;;  %v732_v6 = vld [vmem:[#allocation8 + $0xb8] sm:$0xff]  ;;  %v734_v8 = vld [vmem:[#allocation8 + $0xc8] sm:$0xff]  ;;  %v735_v9 = vld [vmem:[#allocation8 + $0xd0] sm:$0xff] }
  0x51   :  { %783 = vperm.xlu0 %1592, %v717_v39   ;;  %788 = vperm.xlu1 %1593, %v718_v40   ;;  %v1657_v11 = vld [vmem:[#allocation3 + $0xf0] ss:$8 sps:$4 sm:$0xff]   ;;  %v737_v13 = vld [vmem:[#allocation8 + $0xe0] sm:$0xff]  ;;  %v738_v14 = vld [vmem:[#allocation8 + $0xe8] sm:$0xff] }
  0x52   :  { %v736_v12 = vld [vmem:[#allocation8 + $0xd8] sm:$0xff]  ;;  %v739_v15 = vld [vmem:[#allocation8 + $0xf0] sm:$0xff] }
  0x53   :  { %1466 = vmatpush3.bf16.msra.mxu0 %v1607_v16  ;;  %1579 = vmatpush3.bf16.msra.mxu1 %v1607_v16  ;;  %v740_v16 = vld [vmem:[#allocation8 + $0xf8] sm:$0xff] }
  0x54   :  { %1467 = vmatprep.subr.bf16.mxu0 %v1608_v17  ;;  %1572 = vmatprep.subr.bf16.mxu1 %v1608_v17 }
  0x55   :  { %793 = vperm.xlu0 %1592, %v719_v41   ;;  %798 = vperm.xlu1 %1593, %v720_v46  }
  0x57   :  { %1468 = vmatpush3.bf16.msra.mxu0 %v1609_v18  ;;  %1580 = vmatpush3.bf16.msra.mxu1 %v1609_v18 }
  0x59   :  { %803 = vperm.xlu0 %1592, %v721_v47   ;;  %808 = vperm.xlu1 %1593, %v722_v48  }
  0x5a   :  { %482 = vmatmul.mubr.bf16.vlgmr.msra.gmra.mrb[0].mxu0 %v1610_v19  ;;  %546 = vmatmul.mubr.bf16.vlgmr.msra.gmra.mrb[0].mxu1 %v1613_v20 }
  0x5b   :  { %489 = vmatprep.mubr.bf16.mxu0 %v1616_v21  ;;  %553 = vmatprep.mubr.bf16.mxu1 %v1618_v22 }
  0x5d   :  { %813 = vperm.xlu0 %1592, %v723_v49   ;;  %818 = vperm.xlu1 %1593, %v724_v54  }
  0x61   :  { %823 = vperm.xlu0 %1592, %v725_v55   ;;  %828 = vperm.xlu1 %1593, %v726_v56  }
  0x62   :  { %490 = vmatmul.mubr.bf16.gmra.mrb[4].mxu0 %v1620_v25  ;;  %554 = vmatmul.mubr.bf16.gmra.mrb[4].mxu1 %v1621_v26 }
  0x63   :  { %497 = vmatprep.mubr.bf16.mxu0 %v1622_v28  ;;  %561 = vmatprep.mubr.bf16.mxu1 %v1624_v29 }
  0x65   :  { %833 = vperm.xlu0 %1592, %v727_v57   ;;  %838 = vperm.xlu1 %1593, %v728_v62  }
  0x69   :  { %843 = vperm.xlu0 %1592, %v729_v63   ;;  %848 = vperm.xlu1 %1593, %v730_v0  }
  0x6a   :  { %498 = vmatmul.mubr.bf16.gmra.mrb[8].mxu0 %v1626_v34  ;;  %562 = vmatmul.mubr.bf16.gmra.mrb[8].mxu1 %v1627_v35 }
  0x6b   :  { %505 = vmatprep.mubr.bf16.mxu0 %v1628_v36  ;;  %569 = vmatprep.mubr.bf16.mxu1 %v1630_v37 }
  0x6d   :  { %853 = vperm.xlu0 %1592, %v731_v1   ;;  %858 = vperm.xlu1 %1593, %v732_v6  }
  0x71   :  { %863 = vperm.xlu0 %1592, %v733_v7   ;;  %868 = vperm.xlu1 %1593, %v734_v8  }
  0x72   :  { %506 = vmatmul.mubr.bf16.gmra.mrb[12].mxu0 %v1632_v42  ;;  %570 = vmatmul.mubr.bf16.gmra.mrb[12].mxu1 %v1633_v43 }
  0x73   :  { %513 = vmatprep.mubr.bf16.mxu0 %v1634_v44  ;;  %577 = vmatprep.mubr.bf16.mxu1 %v1636_v45 }
  0x75   :  { %873 = vperm.xlu0 %1592, %v735_v9   ;;  %878 = vperm.xlu1 %1593, %v736_v12  }
  0x79   :  { %883 = vperm.xlu0 %1592, %v737_v13   ;;  %888 = vperm.xlu1 %1593, %v738_v14  }
  0x7a   :  { %514 = vmatmul.mubr.bf16.gmra.mrb[16].mxu0 %v1638_v50  ;;  %578 = vmatmul.mubr.bf16.gmra.mrb[16].mxu1 %v1639_v51 }
  0x7b   :  { %521 = vmatprep.mubr.bf16.mxu0 %v1640_v52  ;;  %585 = vmatprep.mubr.bf16.mxu1 %v1642_v53 }
  0x7d   :  { %893 = vperm.xlu0 %1592, %v739_v15   ;;  %898 = vperm.xlu1 %1593, %v740_v16  }
  0x82   :  { %522 = vmatmul.mubr.bf16.gmra.mrb[20].mxu0 %v1644_v58  ;;  %586 = vmatmul.mubr.bf16.gmra.mrb[20].mxu1 %v1645_v59 }
  0x83   :  { %529 = vmatprep.mubr.bf16.mxu0 %v1646_v60  ;;  %593 = vmatprep.mubr.bf16.mxu1 %v1648_v61 }
  0x8a   :  { %530 = vmatmul.mubr.bf16.gmra.mrb[24].mxu0 %v1650_v2  ;;  %594 = vmatmul.mubr.bf16.gmra.mrb[24].mxu1 %v1651_v3 }
  0x8b   :  { %537 = vmatprep.mubr.bf16.mxu0 %v1652_v4  ;;  %601 = vmatprep.mubr.bf16.mxu1 %v1654_v5 }
  0x92   :  { %538 = vmatmul.mubr.bf16.gmra.mrb[28].mxu0 %v1656_v10  ;;  %602 = vmatmul.mubr.bf16.gmra.mrb[28].mxu1 %v1657_v11 }
  0xc0   :  { %v744_v17 = vpop.permute.xlu0 %743  ;;  %v754_v18 = vpop.permute.xlu1 %753 }
  0xc4   :  { %v749_v19 = vpop.permute.xlu0 %748  ;;  %v759_v20 = vpop.permute.xlu1 %758 }
  0xc8   :  { %v1878_v21 = vpop.permute.xlu0 %763  ;;  %v1880_v22 = vpop.permute.xlu1 %768 }
  0xcc   :  { %v1882_v23 = vpop.permute.xlu0 %773  ;;  %v1884_v24 = vpop.permute.xlu1 %778 }
  0xd0   :  { %v1886_v25 = vpop.permute.xlu0 %783  ;;  %v1888_v26 = vpop.permute.xlu1 %788 }
  0xd4   :  { %v1890_v27 = vpop.permute.xlu0 %793  ;;  %v1892_v28 = vpop.permute.xlu1 %798 }
  0xd8   :  { %v1894_v29 = vpop.permute.xlu0 %803  ;;  %v1896_v30 = vpop.permute.xlu1 %808 }
  0xdc   :  { %v1898_v31 = vpop.permute.xlu0 %813  ;;  %v1900_v32 = vpop.permute.xlu1 %818 }
  0xe0   :  { %v824_v33 = vpop.permute.xlu0 %823  ;;  %v829_v48 = vpop.permute.xlu1 %828 }
  0xe4   :  { %v834_v3 = vpop.permute.xlu0 %833  ;;  %v839_v8 = vpop.permute.xlu1 %838 }
 0x12d   :  { %v1469_v34 = vpop.f32.mrb[0].mxu0  ;;  %v1517_v35 = vpop.f32.mrb[0].mxu1 }
 0x12e   :  { %v1470_v36 = vpop.f32.mrb[1].mxu0  ;;  %v1518_v37 = vpop.f32.mrb[1].mxu1 }
 0x12f   :  { %v1471_v38 = vadd.f32 %v1470_v36, %v1469_v34  ;;  %v1472_v39 = vpop.f32.mrb[2].mxu0  ;;  %v1519_v40 = vadd.f32 %v1518_v37, %v1517_v35  ;;  %v1520_v41 = vpop.f32.mrb[2].mxu1 }
 0x130   :  { %v1473_v42 = vpop.f32.mrb[3].mxu0  ;;  %v1521_v43 = vpop.f32.mrb[3].mxu1 }
 0x131   :  { %v901_v44 = vmul.f32 %v1471_v38, %v744_v17  ;;  %v1474_v45 = vadd.f32 %v1473_v42, %v1472_v39  ;;  %v1902_v46 = vmul.f32 %v1519_v40, %v824_v33  ;;  %v1522_v47 = vadd.f32 %v1521_v43, %v1520_v41  ;;  %v844_v41 = vpop.permute.xlu0 %843 }
 0x133   :  { %v902_v49 = vmul.f32 %v1474_v45, %v749_v19  ;;  %v1904_v50 = vmul.f32 %v1522_v47, %v829_v48  ;;  %v1130_v51 = vmul.f32 %v901_v44, %v901_v44  ;;  %v849_v47 = vpop.permute.xlu1 %848 }
 0x135   :  { %v1361_v52 = vpack.c.bf16 %v902_v49, %v901_v44  ;;  %v1093_v53 = vadd.f32 %v902_v49, %v901_v44  ;;  %v1131_v54 = vmul.f32 %v902_v49, %v902_v49  ;;  %v1475_v55 = vpop.f32.mrb[4].mxu0  ;;  %v1401_v56 = vpack.c.bf16 %v1904_v50, %v1902_v46  ;;  %v1523_v57 = vpop.f32.mrb[4].mxu1 }
 0x136   :  { %v1476_v58 = vpop.f32.mrb[5].mxu0  ;;  %v1524_v59 = vpop.f32.mrb[5].mxu1 }
 0x137   :  { %1362 = vst [vmem:[#allocation9] sm:$0xff] %v1361_v52   ;;  %v1162_v60 = vadd.f32 %v1131_v54, %v1130_v51  ;;  %v1477_v61 = vadd.f32 %v1476_v58, %v1475_v55  ;;  %v1478_v62 = vpop.f32.mrb[6].mxu0  ;;  %1445 = vst [vmem:[#allocation9 + $0x40] sm:$0xff] %v1401_v56   ;;  %v1525_v63 = vadd.f32 %v1524_v59, %v1523_v57  ;;  %v1526_v0 = vpop.f32.mrb[6].mxu1 }
 0x138   :  { %v1479_v1 = vpop.f32.mrb[7].mxu0  ;;  %v1527_v2 = vpop.f32.mrb[7].mxu1 }
 0x139   :  { %v903_v4 = vmul.f32 %v1477_v61, %v754_v18  ;;  %v1480_v5 = vadd.f32 %v1479_v1, %v1478_v62  ;;  %v1528_v6 = vadd.f32 %v1527_v2, %v1526_v0  ;;  %v1908_v7 = vmul.f32 %v1525_v63, %v834_v3  ;;  %v854_v3 = vpop.permute.xlu0 %853 }
 0x13b   :  { %v1094_v9 = vadd.f32 %v1093_v53, %v903_v4  ;;  %v1132_v10 = vmul.f32 %v903_v4, %v903_v4  ;;  %v904_v11 = vmul.f32 %v1480_v5, %v759_v20  ;;  %v1910_v12 = vmul.f32 %v1528_v6, %v839_v8 }
 0x13d   :  { %v1163_v13 = vadd.f32 %v1162_v60, %v1132_v10  ;;  %v1366_v14 = vpack.c.bf16 %v904_v11, %v903_v4  ;;  %v1095_v15 = vadd.f32 %v1094_v9, %v904_v11  ;;  %v1133_v16 = vmul.f32 %v904_v11, %v904_v11  ;;  %v1481_v17 = vpop.f32.mrb[8].mxu0  ;;  %v1529_v19 = vpop.f32.mrb[8].mxu1 }
 0x13e   :  { %v1482_v33 = vpop.f32.mrb[9].mxu0  ;;  %v1406_v18 = vpack.c.bf16 %v1910_v12, %v1908_v7  ;;  %v1530_v34 = vpop.f32.mrb[9].mxu1 }
 0x13f   :  { %1438 = vst [vmem:[#allocation9 + $0x8] sm:$0xff] %v1366_v14   ;;  %v1164_v35 = vadd.f32 %v1163_v13, %v1133_v16  ;;  %v1483_v36 = vadd.f32 %v1482_v33, %v1481_v17  ;;  %v1484_v37 = vpop.f32.mrb[10].mxu0  ;;  %v1531_v38 = vadd.f32 %v1530_v34, %v1529_v19  ;;  %v1532_v39 = vpop.f32.mrb[10].mxu1 }
 0x140   :  { %v1485_v20 = vpop.f32.mrb[11].mxu0  ;;  %1446 = vst [vmem:[#allocation9 + $0x48] sm:$0xff] %v1406_v18   ;;  %v1533_v40 = vpop.f32.mrb[11].mxu1 }
 0x141   :  { %v905_v42 = vmul.f32 %v1483_v36, %v1878_v21  ;;  %v1486_v43 = vadd.f32 %v1485_v20, %v1484_v37  ;;  %v1534_v44 = vadd.f32 %v1533_v40, %v1532_v39  ;;  %v1915_v45 = vmul.f32 %v1531_v38, %v844_v41  ;;  %v859_v9 = vpop.permute.xlu1 %858 }
 0x143   :  { %v1096_v48 = vadd.f32 %v1095_v15, %v905_v42  ;;  %v1134_v49 = vmul.f32 %v905_v42, %v905_v42  ;;  %v906_v51 = vmul.f32 %v1486_v43, %v1880_v22  ;;  %v1918_v52 = vmul.f32 %v1534_v44, %v849_v47  ;;  %v864_v44 = vpop.permute.xlu0 %863 }
 0x145   :  { %v1165_v53 = vadd.f32 %v1164_v35, %v1134_v49  ;;  %v1371_v54 = vpack.c.bf16 %v906_v51, %v905_v42  ;;  %v1097_v55 = vadd.f32 %v1096_v48, %v906_v51  ;;  %v1135_v56 = vmul.f32 %v906_v51, %v906_v51  ;;  %v1487_v57 = vpop.f32.mrb[12].mxu0  ;;  %v1535_v58 = vpop.f32.mrb[12].mxu1 }
 0x146   :  { %v1411_v21 = vpack.c.bf16 %v1918_v52, %v1915_v45  ;;  %v1488_v59 = vpop.f32.mrb[13].mxu0  ;;  %v1536_v60 = vpop.f32.mrb[13].mxu1 }
 0x147   :  { %1439 = vst [vmem:[#allocation9 + $0x10] sm:$0xff] %v1371_v54   ;;  %v1166_v61 = vadd.f32 %v1165_v53, %v1135_v56  ;;  %v1489_v62 = vadd.f32 %v1488_v59, %v1487_v57  ;;  %v1537_v63 = vadd.f32 %v1536_v60, %v1535_v58  ;;  %v1490_v0 = vpop.f32.mrb[14].mxu0  ;;  %v1538_v1 = vpop.f32.mrb[14].mxu1 }
 0x148   :  { %1447 = vst [vmem:[#allocation9 + $0x50] sm:$0xff] %v1411_v21   ;;  %v1491_v22 = vpop.f32.mrb[15].mxu0  ;;  %v1539_v2 = vpop.f32.mrb[15].mxu1 }
 0x149   :  { %v907_v4 = vmul.f32 %v1489_v62, %v1882_v23  ;;  %v1492_v5 = vadd.f32 %v1491_v22, %v1490_v0  ;;  %v1540_v6 = vadd.f32 %v1539_v2, %v1538_v1  ;;  %v1923_v8 = vmul.f32 %v1537_v63, %v854_v3  ;;  %v869_v47 = vpop.permute.xlu1 %868 }
 0x14b   :  { %v1098_v10 = vadd.f32 %v1097_v55, %v907_v4  ;;  %v1136_v11 = vmul.f32 %v907_v4, %v907_v4  ;;  %v908_v13 = vmul.f32 %v1492_v5, %v1884_v24  ;;  %v1926_v14 = vmul.f32 %v1540_v6, %v859_v9  ;;  %v874_v6 = vpop.permute.xlu0 %873 }
 0x14d   :  { %v1167_v15 = vadd.f32 %v1166_v61, %v1136_v11  ;;  %v1376_v16 = vpack.c.bf16 %v908_v13, %v907_v4  ;;  %v1099_v17 = vadd.f32 %v1098_v10, %v908_v13  ;;  %v1137_v19 = vmul.f32 %v908_v13, %v908_v13  ;;  %v1493_v33 = vpop.f32.mrb[16].mxu0  ;;  %v1541_v18 = vpop.f32.mrb[16].mxu1 }
 0x14e   :  { %v1416_v23 = vpack.c.bf16 %v1926_v14, %v1923_v8  ;;  %v1494_v34 = vpop.f32.mrb[17].mxu0  ;;  %v1542_v35 = vpop.f32.mrb[17].mxu1 }
 0x14f   :  { %1440 = vst [vmem:[#allocation9 + $0x18] sm:$0xff] %v1376_v16   ;;  %v1168_v36 = vadd.f32 %v1167_v15, %v1137_v19  ;;  %v1495_v37 = vadd.f32 %v1494_v34, %v1493_v33  ;;  %v1543_v38 = vadd.f32 %v1542_v35, %v1541_v18  ;;  %v1496_v39 = vpop.f32.mrb[18].mxu0  ;;  %v1544_v20 = vpop.f32.mrb[18].mxu1 }
 0x150   :  { %1448 = vst [vmem:[#allocation9 + $0x58] sm:$0xff] %v1416_v23   ;;  %v1497_v24 = vpop.f32.mrb[19].mxu0  ;;  %v1545_v40 = vpop.f32.mrb[19].mxu1 }
 0x151   :  { %v909_v41 = vmul.f32 %v1495_v37, %v1886_v25  ;;  %v1498_v42 = vadd.f32 %v1497_v24, %v1496_v39  ;;  %v1546_v43 = vadd.f32 %v1545_v40, %v1544_v20  ;;  %v1932_v53 = vmul.f32 %v1543_v38, %v864_v44  ;;  %v879_v9 = vpop.permute.xlu1 %878  ;;  %v884_v44 = vpop.permute.xlu0 %883 }
 0x153   :  { %v1100_v48 = vadd.f32 %v1099_v17, %v909_v41  ;;  %v1138_v49 = vmul.f32 %v909_v41, %v909_v41  ;;  %v910_v51 = vmul.f32 %v1498_v42, %v1888_v26  ;;  %v1934_v54 = vmul.f32 %v1546_v43, %v869_v47 }
 0x155   :  { %v1169_v55 = vadd.f32 %v1168_v36, %v1138_v49  ;;  %v1381_v56 = vpack.c.bf16 %v910_v51, %v909_v41  ;;  %v1101_v57 = vadd.f32 %v1100_v48, %v910_v51  ;;  %v1139_v58 = vmul.f32 %v910_v51, %v910_v51  ;;  %v1499_v21 = vpop.f32.mrb[20].mxu0  ;;  %v1547_v59 = vpop.f32.mrb[20].mxu1 }
 0x156   :  { %v1421_v25 = vpack.c.bf16 %v1934_v54, %v1932_v53  ;;  %v1500_v60 = vpop.f32.mrb[21].mxu0  ;;  %v1548_v61 = vpop.f32.mrb[21].mxu1 }
 0x157   :  { %1441 = vst [vmem:[#allocation9 + $0x20] sm:$0xff] %v1381_v56   ;;  %v1170_v62 = vadd.f32 %v1169_v55, %v1139_v58  ;;  %v1501_v63 = vadd.f32 %v1500_v60, %v1499_v21  ;;  %v1549_v0 = vadd.f32 %v1548_v61, %v1547_v59  ;;  %v1502_v26 = vpop.f32.mrb[22].mxu0  ;;  %v1550_v1 = vpop.f32.mrb[22].mxu1 }
 0x158   :  { %1449 = vst [vmem:[#allocation9 + $0x60] sm:$0xff] %v1421_v25   ;;  %v1503_v22 = vpop.f32.mrb[23].mxu0  ;;  %v1551_v2 = vpop.f32.mrb[23].mxu1 }
 0x159   :  { %v911_v3 = vmul.f32 %v1501_v63, %v1890_v27  ;;  %v1504_v4 = vadd.f32 %v1503_v22, %v1502_v26  ;;  %v1552_v5 = vadd.f32 %v1551_v2, %v1550_v1  ;;  %v1940_v15 = vmul.f32 %v1549_v0, %v874_v6  ;;  %v889_v47 = vpop.permute.xlu1 %888  ;;  %v894_v6 = vpop.permute.xlu0 %893 }
 0x15b   :  { %v1102_v10 = vadd.f32 %v1101_v57, %v911_v3  ;;  %v1140_v11 = vmul.f32 %v911_v3, %v911_v3  ;;  %v912_v13 = vmul.f32 %v1504_v4, %v1892_v28  ;;  %v1942_v16 = vmul.f32 %v1552_v5, %v879_v9 }
 0x15d   :  { %v1171_v17 = vadd.f32 %v1170_v62, %v1140_v11  ;;  %v1386_v19 = vpack.c.bf16 %v912_v13, %v911_v3  ;;  %v1103_v33 = vadd.f32 %v1102_v10, %v912_v13  ;;  %v1141_v18 = vmul.f32 %v912_v13, %v912_v13  ;;  %v1505_v23 = vpop.f32.mrb[24].mxu0  ;;  %v1553_v34 = vpop.f32.mrb[24].mxu1 }
 0x15e   :  { %v1426_v27 = vpack.c.bf16 %v1942_v16, %v1940_v15  ;;  %v1506_v35 = vpop.f32.mrb[25].mxu0  ;;  %v1554_v36 = vpop.f32.mrb[25].mxu1 }
 0x15f   :  { %1442 = vst [vmem:[#allocation9 + $0x28] sm:$0xff] %v1386_v19   ;;  %v1172_v37 = vadd.f32 %v1171_v17, %v1141_v18  ;;  %v1507_v38 = vadd.f32 %v1506_v35, %v1505_v23  ;;  %v1555_v39 = vadd.f32 %v1554_v36, %v1553_v34  ;;  %v1508_v28 = vpop.f32.mrb[26].mxu0  ;;  %v1556_v20 = vpop.f32.mrb[26].mxu1  ;;  %v1147_v36 = vmul.f32 %v1904_v50, %v1904_v50 }
 0x160   :  { %1450 = vst [vmem:[#allocation9 + $0x68] sm:$0xff] %v1426_v27   ;;  %v1509_v24 = vpop.f32.mrb[27].mxu0  ;;  %v1557_v40 = vpop.f32.mrb[27].mxu1  ;;  %v1146_v27 = vmul.f32 %v1902_v46, %v1902_v46 }
 0x161   :  { %v913_v41 = vmul.f32 %v1507_v38, %v1894_v29  ;;  %v1510_v42 = vadd.f32 %v1509_v24, %v1508_v28  ;;  %v1558_v43 = vadd.f32 %v1557_v40, %v1556_v20  ;;  %v1948_v55 = vmul.f32 %v1555_v39, %v884_v44  ;;  %v899_v9 = vpop.permute.xlu1 %898 }
 0x163   :  { %v1104_v48 = vadd.f32 %v1103_v33, %v913_v41  ;;  %v1142_v49 = vmul.f32 %v913_v41, %v913_v41  ;;  %v914_v51 = vmul.f32 %v1510_v42, %v1896_v30  ;;  %v1950_v56 = vmul.f32 %v1558_v43, %v889_v47 }
 0x165   :  { %v1173_v57 = vadd.f32 %v1172_v37, %v1142_v49  ;;  %v1391_v58 = vpack.c.bf16 %v914_v51, %v913_v41  ;;  %v1105_v21 = vadd.f32 %v1104_v48, %v914_v51  ;;  %v1143_v59 = vmul.f32 %v914_v51, %v914_v51  ;;  %v1511_v25 = vpop.f32.mrb[28].mxu0  ;;  %v1559_v60 = vpop.f32.mrb[28].mxu1 }
 0x166   :  { %v1431_v29 = vpack.c.bf16 %v1950_v56, %v1948_v55  ;;  %v1512_v61 = vpop.f32.mrb[29].mxu0  ;;  %v1560_v62 = vpop.f32.mrb[29].mxu1 }
 0x167   :  { %1443 = vst [vmem:[#allocation9 + $0x30] sm:$0xff] %v1391_v58   ;;  %v1174_v63 = vadd.f32 %v1173_v57, %v1143_v59  ;;  %v1513_v0 = vadd.f32 %v1512_v61, %v1511_v25  ;;  %v1561_v26 = vadd.f32 %v1560_v62, %v1559_v60  ;;  %v1514_v30 = vpop.f32.mrb[30].mxu0  ;;  %v1562_v1 = vpop.f32.mrb[30].mxu1 }
 0x168   :  { %1451 = vst [vmem:[#allocation9 + $0x70] sm:$0xff] %v1431_v29   ;;  %v1515_v22 = vpop.f32.mrb[31].mxu0  ;;  %v1563_v2 = vpop.f32.mrb[31].mxu1 }
 0x169   :  { %v915_v3 = vmul.f32 %v1513_v0, %v1898_v31  ;;  %v1516_v4 = vadd.f32 %v1515_v22, %v1514_v30  ;;  %v1564_v5 = vadd.f32 %v1563_v2, %v1562_v1  ;;  %v1956_v17 = vmul.f32 %v1561_v26, %v894_v6 }
 0x16b   :  { %v1106_v10 = vadd.f32 %v1105_v21, %v915_v3  ;;  %v1144_v11 = vmul.f32 %v915_v3, %v915_v3  ;;  %v916_v13 = vmul.f32 %v1516_v4, %v1900_v32  ;;  %v1958_v19 = vmul.f32 %v1564_v5, %v899_v9 }
 0x16d   :  { %v1175_v33 = vadd.f32 %v1174_v63, %v1144_v11  ;;  %v1396_v18 = vpack.c.bf16 %v916_v13, %v915_v3  ;;  %v1107_v23 = vadd.f32 %v1106_v10, %v916_v13  ;;  %v1145_v34 = vmul.f32 %v916_v13, %v916_v13 }
 0x16e   :  { %v1436_v31 = vpack.c.bf16 %v1958_v19, %v1956_v17 }
 0x16f   :  { %1444 = vst [vmem:[#allocation9 + $0x38] sm:$0xff] %v1396_v18   ;;  %v1108_v32 = vadd.f32 %v1107_v23, %v1902_v46  ;;  %v1176_v35 = vadd.f32 %v1175_v33, %v1145_v34 }
 0x170   :  { %1452 = vst [vmem:[#allocation9 + $0x78] sm:$0xff] %v1436_v31  }
 0x171   :  { %v1109_v37 = vadd.f32 %v1108_v32, %v1904_v50  ;;  %v1177_v38 = vadd.f32 %v1176_v35, %v1146_v27 }
 0x172   :  { %1735 = shalt.err (!%p1732_p0)
}
 0x173   :  { %s1736_s12 = scalar_lea.hbm %s2052_s3, 2048 }
 0x174   :  { %p1737_p1 = scmp.ne.s32.totalorder %s2052_s3, %s1736_s12  ;;  %p1740_p2 = scmp.lt.u32.totalorder %s1736_s12, %s2052_s3 }
 0x176   :  { %p1742_p3 = pnand %p1740_p2, %p1737_p1 }
 0x178   :  { %1745 = shalt.err (!%p1742_p3)
}
 0x179   :  { %1212 = dma.vmem_to_hbm [thread:$0]  %s1207_s8, 2048, %s2052_s3, [#allocation5], %s1799_s28, %s1799_s28, %s1800_s29   ;;  %v1148_v46 = vmul.f32 %v1908_v7, %v1908_v7  ;;  %v1110_v50 = vadd.f32 %v1109_v37, %v1908_v7  ;;  %v1178_v39 = vadd.f32 %v1177_v38, %v1147_v36  ;;  %v1149_v28 = vmul.f32 %v1910_v12, %v1910_v12 }
 0x17a   :  { %v1150_v40 = vmul.f32 %v1915_v45, %v1915_v45  ;;  %v1151_v43 = vmul.f32 %v1918_v52, %v1918_v52  ;;  %v1152_v7 = vmul.f32 %v1923_v8, %v1923_v8  ;;  %v1161_v2 = vmul.f32 %v1958_v19, %v1958_v19  ;;  %s1807_s3 = smov [#allocation10]   ;;  %s1808_s29 = smov [#allocation12]  }
 0x17b   :  { %v1111_v20 = vadd.f32 %v1110_v50, %v1910_v12  ;;  %v1179_v24 = vadd.f32 %v1178_v39, %v1148_v46  ;;  %v1153_v12 = vmul.f32 %v1926_v14, %v1926_v14  ;;  %s1219_s28 = sshll.u32 %s1807_s3, 4  ;;  %s1229_s18 = sshll.u32 %s1808_s29, 4  ;;  %s1220_s28 = int_to_ptr.vmem [resolvable:$true] %s1219_s28  ;;  %s1230_s18 = int_to_ptr.vmem [resolvable:$true] %s1229_s18 }
 0x17c   :  { %s1746_s19 = scalar_lea.vmem %s1220_s28, 128  ;;  %p1751_p5 = scmp.lt.s32.totalorder %s1220_s28, %s1220_s28 }
 0x17d   :  { %v1112_v41 = vadd.f32 %v1111_v20, %v1915_v45  ;;  %v1180_v42 = vadd.f32 %v1179_v24, %v1149_v28  ;;  %v1154_v45 = vmul.f32 %v1932_v53, %v1932_v53  ;;  %p1747_p4 = scmp.ne.s32.totalorder %s1220_s28, %s1746_s19  ;;  %p1752_p6 = scmp.lt.s32.totalorder %s1746_s19, %s1746_s19 }
 0x17f   :  { %v1113_v44 = vadd.f32 %v1112_v41, %v1918_v52  ;;  %v1181_v47 = vadd.f32 %v1180_v42, %v1150_v40  ;;  %v1155_v52 = vmul.f32 %v1934_v54, %v1934_v54  ;;  %p1753_p7 = por %p1752_p6, %p1751_p5 }
 0x181   :  { %v1114_v48 = vadd.f32 %v1113_v44, %v1923_v8  ;;  %v1182_v49 = vadd.f32 %v1181_v47, %v1151_v43  ;;  %v1156_v8 = vmul.f32 %v1940_v15, %v1940_v15  ;;  %p1754_p8 = pnand %p1753_p7, %p1747_p4 }
 0x183   :  { %v1183_v51 = vadd.f32 %v1182_v49, %v1152_v7  ;;  %v1115_v57 = vadd.f32 %v1114_v48, %v1926_v14  ;;  %v1157_v14 = vmul.f32 %v1942_v16, %v1942_v16 }
 0x185   :  { %v1116_v58 = vadd.f32 %v1115_v57, %v1932_v53  ;;  %v1184_v21 = vadd.f32 %v1183_v51, %v1153_v12  ;;  %v1158_v53 = vmul.f32 %v1948_v55, %v1948_v55 }
 0x187   :  { %v1117_v59 = vadd.f32 %v1116_v58, %v1934_v54  ;;  %v1185_v25 = vadd.f32 %v1184_v21, %v1154_v45  ;;  %v1159_v54 = vmul.f32 %v1950_v56, %v1950_v56 }
 0x189   :  { %v1118_v60 = vadd.f32 %v1117_v59, %v1940_v15  ;;  %v1186_v29 = vadd.f32 %v1185_v25, %v1155_v52  ;;  %v1160_v15 = vmul.f32 %v1956_v17, %v1956_v17 }
 0x18b   :  { %v1119_v61 = vadd.f32 %v1118_v60, %v1942_v16  ;;  %v1187_v62 = vadd.f32 %v1186_v29, %v1156_v8 }
 0x18d   :  { %v1120_v63 = vadd.f32 %v1119_v61, %v1948_v55  ;;  %v1188_v0 = vadd.f32 %v1187_v62, %v1157_v14 }
 0x18f   :  { %v1121_v26 = vadd.f32 %v1120_v63, %v1950_v56  ;;  %v1189_v30 = vadd.f32 %v1188_v0, %v1158_v53 }
 0x191   :  { %v1122_v1 = vadd.f32 %v1121_v26, %v1956_v17  ;;  %v1190_v22 = vadd.f32 %v1189_v30, %v1159_v54 }
 0x193   :  { %v1123_v16 = vadd.f32 %v1122_v1, %v1958_v19  ;;  %v1191_v3 = vadd.f32 %v1190_v22, %v1160_v15 }
 0x195   :  { %v1124_v55 = vrot.slane %v1123_v16, 4  ;;  %v1192_v4 = vadd.f32 %v1191_v3, %v1161_v2 }
 0x197   :  { %v1193_v5 = vrot.slane %v1192_v4, 4  ;;  %v1125_v6 = vadd.f32 %v1124_v55, %v1123_v16 }
 0x199   :  { %v1126_v9 = vrot.slane %v1125_v6, 2  ;;  %v1194_v10 = vadd.f32 %v1193_v5, %v1192_v4 }
 0x19b   :  { %v1127_v56 = vadd.f32 %v1126_v9, %v1125_v6  ;;  %v1195_v11 = vrot.slane %v1194_v10, 2 }
 0x19d   :  { %v1128_v13 = vrot.slane %v1127_v56, 1  ;;  %v1196_v33 = vadd.f32 %v1195_v11, %v1194_v10 }
 0x19f   :  { %v1129_v17 = vadd.f32 %v1128_v13, %v1127_v56  ;;  %v1197_v18 = vrot.slane %v1196_v33, 1 }
 0x1a1   :  { %1199 = vst [vmem:[#allocation10] sm:$0xff] %v1129_v17  ;;  %v1198_v19 = vadd.f32 %v1197_v18, %v1196_v33 }
 0x1a2   :  { %1757 = shalt.err (!%p1754_p8)
}
 0x1a3   :  { %s1758_s22 = scalar_lea.hbm %s2053_s4, 128 }
 0x1a4   :  { %p1759_p9 = scmp.ne.s32.totalorder %s2053_s4, %s1758_s22  ;;  %p1762_p10 = scmp.lt.u32.totalorder %s1758_s22, %s2053_s4 }
 0x1a6   :  { %p1764_p11 = pnand %p1762_p10, %p1759_p9 }
 0x1a8   :  { %1767 = shalt.err (!%p1764_p11)
}
 0x1a9   :  { %1222 = dma.vmem_to_hbm [thread:$0]  %s1220_s28, 128, %s2053_s4, [#allocation11]   ;;  %1200 = vst [vmem:[#allocation12] sm:$0xff] %v1198_v19 }
 0x1aa   :  { %s1768_s6 = scalar_lea.vmem %s1230_s18, 128  ;;  %p1773_p13 = scmp.lt.s32.totalorder %s1230_s18, %s1230_s18 }
 0x1ab   :  { %p1769_p12 = scmp.ne.s32.totalorder %s1230_s18, %s1768_s6  ;;  %p1774_p0 = scmp.lt.s32.totalorder %s1768_s6, %s1768_s6 }
 0x1ad   :  { %p1775_p1 = por %p1774_p0, %p1773_p13 }
 0x1af   :  { %p1776_p2 = pnand %p1775_p1, %p1769_p12 }
 0x1b1   :  { %1779 = shalt.err (!%p1776_p2)
}
 0x1b2   :  { %s1780_s2 = scalar_lea.hbm %s2054_s5, 128 }
 0x1b3   :  { %p1781_p3 = scmp.ne.s32.totalorder %s2054_s5, %s1780_s2  ;;  %p1784_p4 = scmp.lt.u32.totalorder %s1780_s2, %s2054_s5 }
 0x1b5   :  { %p1786_p5 = pnand %p1784_p4, %p1781_p3 }
 0x1b7   :  { %1789 = shalt.err (!%p1786_p5)
}
 0x1b8   :  { %1232 = dma.vmem_to_hbm [thread:$0]  %s1230_s18, 128, %s2054_s5, [#allocation11]  }
 0x1b9   :  { %1794 = dma.done.wait [#allocation5], 2048  }
 0x1ba   :  { %1795 = vsyncadd [#allocation5], 4294965248 }
 0x1bb   :  { %1796 = dma.done.wait [#allocation11], 256  }
 0x1bc   :  { %1797 = vsyncadd [#allocation11], 4294967040 }
 0x1bd   :  { %1242 = vsyncpa [#allocation4], 1 }
 0x1be   :  { %1243 = vsyncpa [#allocation7], 1 }
 0x1bf   :  { %1244 = vsyncpa [#allocation5], 1 }
 0x1c0   :  { %1245 = vsyncpa [#allocation11], 1 }

</bundles_post_ra>
